<compile_context>
chip_gen: v7x
topology: tpu7x:2x2x1
jax: 0.10.0
libtpu: 0.0.40
codegen_flags: <defaults>
</compile_context>

<pallas_src>
import math

import jax
import jax.numpy as jnp
from jax import lax
from jax.experimental import pallas as pl
from jax.experimental.pallas import tpu as pltpu


_ROW_TILE = 512   # projection row tile (B*S rows, batch collapsed)
_Q_TILE = 512     # attention query tile (shrink to 256 on v7x if VMEM-tight)
_K_TILE = 256     # attention key/value tile


def _pick_tile(total, max_tile, *, prefer_split=False):
    """Largest tile <= max_tile that divides `total` and respects the TPU
    sublane granularity (multiple of 8, or the full extent).  With
    prefer_split, halve a single full-extent block when possible so both v7x
    TensorCores get work on the parallel axis."""
    if total <= max_tile:
        tile = total
    else:
        tile = None
        start = max_tile - (max_tile % 8)
        for t in range(start, 7, -8):
            if total % t == 0:
                tile = t
                break
        if tile is None:
            tile = total  # fall back to one (oversized) block
    if prefer_split and tile == total and total % 16 == 0:
        tile = total // 2
    return tile


# ---------------------------------------------------------------------------
# Key / value projection kernel (batch collapsed to B*Sk rows)
#   optional extra_linear -> key_proj / value_proj, two independent dot chains
#   (no concatenate: the concat saved zero MXU FLOPs and cost vst/vld + VMEM).
# ---------------------------------------------------------------------------

def _make_kv_proj_kernel(apply_extra):
    def kernel(*refs):
        if apply_extra:
            (k_ref, v_ref, we_ref, be_ref, wk_ref, bk_ref, wv_ref, bv_ref,
             ko_ref, vo_ref) = refs
        else:
            (k_ref, v_ref, wk_ref, bk_ref, wv_ref, bv_ref,
             ko_ref, vo_ref) = refs
            we_ref = be_ref = None

        cdt = k_ref.dtype                      # MXU operand dtype = input dtype
        k = k_ref[...]
        v = v_ref[...]
        if apply_extra:                        # feature_dim != 768 branch
            we = we_ref[...]
            be = be_ref[...]                   # bias stays f32; added to f32 acc
            k = (jnp.dot(k, we, preferred_element_type=jnp.float32) + be).astype(cdt)
            v = (jnp.dot(v, we, preferred_element_type=jnp.float32) + be).astype(cdt)
        ko = jnp.dot(k, wk_ref[...], preferred_element_type=jnp.float32) + bk_ref[...]
        vo = jnp.dot(v, wv_ref[...], preferred_element_type=jnp.float32) + bv_ref[...]
        ko_ref[...] = ko.astype(ko_ref.dtype)
        vo_ref[...] = vo.astype(vo_ref.dtype)
    return kernel


def _project_kv(k2d, v2d, prepped, apply_extra):
    M, D = k2d.shape
    tm = _pick_tile(M, _ROW_TILE, prefer_split=True)
    assert M % tm == 0, f"row count {M} not divisible by tile {tm}"

    row_spec = pl.BlockSpec((tm, D), lambda i: (i, 0))
    w_spec = pl.BlockSpec((D, D), lambda i: (0, 0))     # grid-invariant
    b_spec = pl.BlockSpec((1, D), lambda i: (0, 0))

    in_specs = [row_spec, row_spec]
    args = [k2d, v2d]
    if apply_extra:
        in_specs += [w_spec, b_spec]
        args += [prepped["extra_wT"], prepped["extra_b"]]
    in_specs += [w_spec, b_spec, w_spec, b_spec]
    args += [prepped["key_wT"], prepped["key_b"],
             prepped["value_wT"], prepped["value_b"]]

    return pl.pallas_call(
        _make_kv_proj_kernel(apply_extra),
        out_shape=(jax.ShapeDtypeStruct((M, D), k2d.dtype),
                   jax.ShapeDtypeStruct((M, D), v2d.dtype)),
        grid_spec=pltpu.PrefetchScalarGridSpec(
            num_scalar_prefetch=0,
            grid=(M // tm,),
            in_specs=in_specs,
            out_specs=(row_spec, row_spec)),
        compiler_params=pltpu.CompilerParams(
            dimension_semantics=("parallel",)),
    )(*args)


# ---------------------------------------------------------------------------
# Fused query-projection + flash attention kernel
#   grid = (B, Sq tiles, Sk tiles); q is projected (text_linear? -> query_proj,
#   with the 1/sqrt(D) scale folded in) once per (b, i) at j == 0 and kept in a
#   VMEM scratch, eliminating the q2 HBM round trip.
# ---------------------------------------------------------------------------

def _make_attention_kernel(scale, apply_text):
    def kernel(*refs):
        if apply_text:
            (xq_ref, wt_ref, bt_ref, wq_ref, bq_ref, k_ref, v_ref,
             o_ref, q_sc, m_sc, l_sc, acc_sc) = refs
        else:
            (xq_ref, wq_ref, bq_ref, k_ref, v_ref,
             o_ref, q_sc, m_sc, l_sc, acc_sc) = refs
            wt_ref = bt_ref = None

        j = pl.program_id(2)

        @pl.when(j == 0)
        def _init():
            cdt = xq_ref.dtype
            x = xq_ref[...]
            if apply_text:                     # feature_dim != 768 branch
                x = (jnp.dot(x, wt_ref[...], preferred_element_type=jnp.float32)
                     + bt_ref[...]).astype(cdt)
            q = jnp.dot(x, wq_ref[...], preferred_element_type=jnp.float32) + bq_ref[...]
            # Fold the softmax 1/sqrt(D) scale into q (Sq x D op, not Sq x Sk).
            q_sc[...] = (q * scale).astype(q_sc.dtype)
            m_sc[...] = jnp.full_like(m_sc, -jnp.inf)
            l_sc[...] = jnp.zeros_like(l_sc)
            acc_sc[...] = jnp.zeros_like(acc_sc)

        k = k_ref[...]
        v = v_ref[...]
        # scores = q @ k^T via contraction over last dims (no XLU transpose of K).
        s = lax.dot_general(q_sc[...], k, (((1,), (1,)), ((), ())),
                            preferred_element_type=jnp.float32)

        m_prev = m_sc[...]
        m_new = jnp.maximum(m_prev, jnp.max(s, axis=-1, keepdims=True))
        alpha = jnp.exp(m_prev - m_new)
        p = jnp.exp(s - m_new)
        l_sc[...] = alpha * l_sc[...] + jnp.sum(p, axis=-1, keepdims=True)
        acc_sc[...] = alpha * acc_sc[...] + jnp.dot(
            p.astype(v.dtype), v, preferred_element_type=jnp.float32)
        m_sc[...] = m_new

        @pl.when(j == pl.num_programs(2) - 1)
        def _finalize():
            inv_l = pl.reciprocal(l_sc[...], approx=False)   # exact: keep tol tight
            # dropout: identity (eval mode)
            o_ref[...] = (acc_sc[...] * inv_l).astype(o_ref.dtype)
    return kernel


def _attention(q_raw, k, v, prepped, *, scale, apply_text, q_tile=None, k_tile=None):
    B, Sq, D = q_raw.shape
    _, Sk, _ = k.shape
    tq = q_tile if q_tile is not None else _pick_tile(Sq, _Q_TILE, prefer_split=(B == 1))
    tk = k_tile if k_tile is not None else _pick_tile(Sk, _K_TILE)
    assert Sq % tq == 0 and Sk % tk == 0, "seq lengths must divide the tiles"

    xq_spec = pl.BlockSpec((None, tq, D), lambda b, i, j: (b, i, 0))
    w_spec = pl.BlockSpec((D, D), lambda b, i, j: (0, 0))      # grid-invariant
    b_spec = pl.BlockSpec((1, D), lambda b, i, j: (0, 0))
    kv_spec = pl.BlockSpec((None, tk, D), lambda b, i, j: (b, j, 0))
    o_spec = pl.BlockSpec((None, tq, D), lambda b, i, j: (b, i, 0))

    in_specs = [xq_spec]
    args = [q_raw]
    if apply_text:
        in_specs += [w_spec, b_spec]
        args += [prepped["text_wT"], prepped["text_b"]]
    in_specs += [w_spec, b_spec, kv_spec, kv_spec]
    args += [prepped["query_wT"], prepped["query_b"], k, v]

    return pl.pallas_call(
        _make_attention_kernel(scale, apply_text),
        out_shape=jax.ShapeDtypeStruct((B, Sq, D), q_raw.dtype),
        grid_spec=pltpu.PrefetchScalarGridSpec(
            num_scalar_prefetch=0,
            grid=(B, Sq // tq, Sk // tk),
            in_specs=in_specs,
            out_specs=o_spec,
            scratch_shapes=[pltpu.VMEM((tq, D), q_raw.dtype),    # projected q tile
                            pltpu.VMEM((tq, 1), jnp.float32),    # running max
                            pltpu.VMEM((tq, 1), jnp.float32),    # running sum
                            pltpu.VMEM((tq, D), jnp.float32)]),  # accumulator
        compiler_params=pltpu.CompilerParams(
            dimension_semantics=("parallel", "parallel", "arbitrary")),
    )(*args)


# ---------------------------------------------------------------------------
# Public forward + parameter helpers
# ---------------------------------------------------------------------------

def cross_attention(query, key, value, prepped, *, q_tile=None, k_tile=None):
    """query: [B, Sq, D], key/value: [B, Sk, D].  Returns [B, Sq, D]."""
    B, Sq, Dq = query.shape
    _, Sk, Dk = key.shape
    assert Dq == Dk, "query/key feature dims must match for the score matmul"
    scale = 1.0 / math.sqrt(float(Dk))        # key.size(-1) after projection == D
    apply_text = (Dq != 768)
    apply_extra = (Dk != 768)

    k2, v2 = _project_kv(key.reshape(B * Sk, Dk), value.reshape(B * Sk, Dk),
                         prepped, apply_extra)
    k2 = k2.reshape(B, Sk, Dk)
    v2 = v2.reshape(B, Sk, Dk)

    return _attention(query, k2, v2, prepped,
                      scale=scale, apply_text=apply_text,
                      q_tile=q_tile, k_tile=k_tile)


def init_params(key, feature_dim):
    """Deterministic init mimicking nn.Linear default (uniform +-1/sqrt(in)),
    stored PyTorch-style: W (out, in), b (out,)."""
    names = ["text", "extra", "query", "key", "value"]
    bound = 1.0 / math.sqrt(feature_dim)
    params = {}
    keys = jax.random.split(key, 2 * len(names))
    for i, n in enumerate(names):
        params[n + "_w"] = jax.random.uniform(
            keys[2 * i], (feature_dim, feature_dim),
            minval=-bound, maxval=bound, dtype=jnp.float32)
        params[n + "_b"] = jax.random.uniform(
            keys[2 * i + 1], (feature_dim,),
            minval=-bound, maxval=bound, dtype=jnp.float32)
    return params


def prepare_params(params, compute_dtype=jnp.float32):
    """One-time layout prep (setup time, NOT per forward call):
    (out, in) weights -> (in, out) in the MXU operand dtype (bf16 for v6e/v7x
    peak throughput); biases stay f32 (added to the f32 accumulators)."""
    prepped = {}
    for n in ("text", "extra", "query", "key", "value"):
        prepped[n + "_wT"] = jnp.transpose(params[n + "_w"]).astype(compute_dtype)
        prepped[n + "_b"] = params[n + "_b"].reshape(1, -1).astype(jnp.float32)
    return prepped


def cross_attention_ref(query, key, value, params):
    """Pure-JAX reference (mirrors the PyTorch forward), f32 throughout."""
    def lin(x, n):
        return jnp.dot(x, params[n + "_w"].T, precision="highest") + params[n + "_b"]
    q = query if query.shape[-1] == 768 else lin(query, "text")
    if key.shape[-1] != 768:
        k = lin(key, "extra")
        v = lin(value, "extra")
    else:
        k, v = key, value
    q, k, v = lin(q, "query"), lin(k, "key"), lin(v, "value")
    scores = jnp.einsum("bqd,bkd->bqk", q, k, precision="highest") / jnp.sqrt(
        jnp.asarray(k.shape[-1], jnp.float32))
    w = jax.nn.softmax(scores, axis=-1)
    return jnp.einsum("bqk,bkd->bqd", w, v, precision="highest")


if __name__ == "__main__":
    # ---- Test A: feature_dim=128 (lane-dense, != 768 so both branch linears
    #      run), f32, multiple q- and k-tiles to exercise the online softmax.
    D = 128
    B, Sq, Sk = 2, 16, 16
    root = jax.random.PRNGKey(0)
    kp, kq, kk, kv = jax.random.split(root, 4)
    params = init_params(kp, D)
    prepped = prepare_params(params, jnp.float32)

    query = jax.random.normal(kq, (B, Sq, D), dtype=jnp.float32)
    key = jax.random.normal(kk, (B, Sk, D), dtype=jnp.float32)
    value = jax.random.normal(kv, (B, Sk, D), dtype=jnp.float32)

    out = jax.block_until_ready(
        cross_attention(query, key, value, prepped, q_tile=8, k_tile=8))
    ref = cross_attention_ref(query, key, value, params)
    assert out.shape == (B, Sq, D)
    err_a = float(jnp.max(jnp.abs(out - ref)))
    # Tolerance only covers f32 accumulation-order differences (exact reciprocal).
    assert jnp.allclose(out, ref, atol=1e-3, rtol=1e-3), \
        f"f32 mismatch vs reference (max abs err {err_a})"

    # ---- Test B: feature_dim=768 fast path (text/extra linears skipped and
    #      their weights never DMA'd), bf16 MXU operands with f32 accumulation.
    D = 768
    B, Sq, Sk = 1, 16, 32
    kp, kq, kk, kv = jax.random.split(jax.random.PRNGKey(1), 4)
    params = init_params(kp, D)
    prepped_bf16 = prepare_params(params, jnp.bfloat16)

    query = jax.random.normal(kq, (B, Sq, D), dtype=jnp.float32).astype(jnp.bfloat16)
    key = jax.random.normal(kk, (B, Sk, D), dtype=jnp.float32).astype(jnp.bfloat16)
    value = jax.random.normal(kv, (B, Sk, D), dtype=jnp.float32).astype(jnp.bfloat16)

    out_b = jax.block_until_ready(cross_attention(query, key, value, prepped_bf16))
    # Reference sees the same bf16-rounded operands, evaluated in f32.
    params_q = {name: (arr.astype(jnp.bfloat16).astype(jnp.float32)
                       if name.endswith("_w") else arr)
                for name, arr in params.items()}
    ref_b = cross_attention_ref(query.astype(jnp.float32), key.astype(jnp.float32),
                                value.astype(jnp.float32), params_q)
    err_b = float(jnp.max(jnp.abs(out_b.astype(jnp.float32) - ref_b)))
    assert jnp.allclose(out_b.astype(jnp.float32), ref_b, atol=5e-2, rtol=5e-2), \
        f"bf16 mismatch vs reference (max abs err {err_b})"

    print("KERNEL_OK")
</pallas_src>

<mosaic_0001>
module attributes {stable_mosaic.version = 11 : i64} {
  func.func @kernel(%arg0: i32, %arg1: memref<16x128xf32, #tpu.memory_space<vmem>>, %arg2: memref<16x128xf32, #tpu.memory_space<vmem>>, %arg3: memref<128x128xf32, #tpu.memory_space<vmem>>, %arg4: memref<1x128xf32, #tpu.memory_space<vmem>>, %arg5: memref<128x128xf32, #tpu.memory_space<vmem>>, %arg6: memref<1x128xf32, #tpu.memory_space<vmem>>, %arg7: memref<128x128xf32, #tpu.memory_space<vmem>>, %arg8: memref<1x128xf32, #tpu.memory_space<vmem>>, %arg9: memref<16x128xf32, #tpu.memory_space<vmem>>, %arg10: memref<16x128xf32, #tpu.memory_space<vmem>>) attributes {dimension_semantics = [#tpu.dimension_semantics<parallel>], iteration_bounds = array<i64: 2>, scalar_prefetch = 0 : i64, scratch_operands = 0 : i64, tpu.core_type = #tpu.core_type<tc>, window_params = [{transform_indices = @transform_0, window_bounds = array<i64: 16, 128>}, {transform_indices = @transform_1, window_bounds = array<i64: 16, 128>}, {pipeline_mode = #tpu.pipeline_mode<synchronous>, transform_indices = @transform_2, window_bounds = array<i64: 128, 128>}, {pipeline_mode = #tpu.pipeline_mode<synchronous>, transform_indices = @transform_3, window_bounds = array<i64: 1, 128>}, {pipeline_mode = #tpu.pipeline_mode<synchronous>, transform_indices = @transform_4, window_bounds = array<i64: 128, 128>}, {pipeline_mode = #tpu.pipeline_mode<synchronous>, transform_indices = @transform_5, window_bounds = array<i64: 1, 128>}, {pipeline_mode = #tpu.pipeline_mode<synchronous>, transform_indices = @transform_6, window_bounds = array<i64: 128, 128>}, {pipeline_mode = #tpu.pipeline_mode<synchronous>, transform_indices = @transform_7, window_bounds = array<i64: 1, 128>}, {transform_indices = @transform_8, window_bounds = array<i64: 16, 128>}, {transform_indices = @transform_9, window_bounds = array<i64: 16, 128>}]} {
    %c0 = arith.constant 0 : index
    %c0_0 = arith.constant 0 : index
    %0 = vector.load %arg1[%c0, %c0_0] : memref<16x128xf32, #tpu.memory_space<vmem>>, vector<16x128xf32>
    %c0_1 = arith.constant 0 : index
    %c0_2 = arith.constant 0 : index
    %1 = vector.load %arg2[%c0_1, %c0_2] : memref<16x128xf32, #tpu.memory_space<vmem>>, vector<16x128xf32>
    %c0_3 = arith.constant 0 : index
    %c0_4 = arith.constant 0 : index
    %2 = vector.load %arg3[%c0_3, %c0_4] : memref<128x128xf32, #tpu.memory_space<vmem>>, vector<128x128xf32>
    %c0_5 = arith.constant 0 : index
    %c0_6 = arith.constant 0 : index
    %3 = vector.load %arg4[%c0_5, %c0_6] : memref<1x128xf32, #tpu.memory_space<vmem>>, vector<1x128xf32>
    %cst = arith.constant dense<0.000000e+00> : vector<16x128xf32>
    %4 = tpu.matmul %0, %2, %cst {dimension_numbers = #tpu.dot_dimension_numbers<[1], [0], [0], [1], [0, 0, 1, 1], [], []>} : vector<16x128xf32>, vector<128x128xf32>, vector<16x128xf32> -> vector<16x128xf32>
    %5 = vector.broadcast %3 : vector<1x128xf32> to vector<16x128xf32>
    %6 = arith.addf %4, %5 : vector<16x128xf32>
    %cst_7 = arith.constant dense<0.000000e+00> : vector<16x128xf32>
    %7 = tpu.matmul %1, %2, %cst_7 {dimension_numbers = #tpu.dot_dimension_numbers<[1], [0], [0], [1], [0, 0, 1, 1], [], []>} : vector<16x128xf32>, vector<128x128xf32>, vector<16x128xf32> -> vector<16x128xf32>
    %8 = vector.broadcast %3 : vector<1x128xf32> to vector<16x128xf32>
    %9 = arith.addf %7, %8 : vector<16x128xf32>
    %c0_8 = arith.constant 0 : index
    %c0_9 = arith.constant 0 : index
    %10 = vector.load %arg5[%c0_8, %c0_9] : memref<128x128xf32, #tpu.memory_space<vmem>>, vector<128x128xf32>
    %cst_10 = arith.constant dense<0.000000e+00> : vector<16x128xf32>
    %11 = tpu.matmul %6, %10, %cst_10 {dimension_numbers = #tpu.dot_dimension_numbers<[1], [0], [0], [1], [0, 0, 1, 1], [], []>} : vector<16x128xf32>, vector<128x128xf32>, vector<16x128xf32> -> vector<16x128xf32>
    %c0_11 = arith.constant 0 : index
    %c0_12 = arith.constant 0 : index
    %12 = vector.load %arg6[%c0_11, %c0_12] : memref<1x128xf32, #tpu.memory_space<vmem>>, vector<1x128xf32>
    %13 = vector.broadcast %12 : vector<1x128xf32> to vector<16x128xf32>
    %14 = arith.addf %11, %13 : vector<16x128xf32>
    %c0_13 = arith.constant 0 : index
    %c0_14 = arith.constant 0 : index
    %15 = vector.load %arg7[%c0_13, %c0_14] : memref<128x128xf32, #tpu.memory_space<vmem>>, vector<128x128xf32>
    %cst_15 = arith.constant dense<0.000000e+00> : vector<16x128xf32>
    %16 = tpu.matmul %9, %15, %cst_15 {dimension_numbers = #tpu.dot_dimension_numbers<[1], [0], [0], [1], [0, 0, 1, 1], [], []>} : vector<16x128xf32>, vector<128x128xf32>, vector<16x128xf32> -> vector<16x128xf32>
    %c0_16 = arith.constant 0 : index
    %c0_17 = arith.constant 0 : index
    %17 = vector.load %arg8[%c0_16, %c0_17] : memref<1x128xf32, #tpu.memory_space<vmem>>, vector<1x128xf32>
    %18 = vector.broadcast %17 : vector<1x128xf32> to vector<16x128xf32>
    %19 = arith.addf %16, %18 : vector<16x128xf32>
    %c0_18 = arith.constant 0 : index
    %c0_19 = arith.constant 0 : index
    %20 = vector.load %arg9[%c0_18, %c0_19] : memref<16x128xf32, #tpu.memory_space<vmem>>, vector<16x128xf32>
    tpu.vector_store %arg9[%c0_18, %c0_19], %14 {strides = array<i32>} : memref<16x128xf32, #tpu.memory_space<vmem>>, vector<16x128xf32>,
    %c0_20 = arith.constant 0 : index
    %c0_21 = arith.constant 0 : index
    %21 = vector.load %arg10[%c0_20, %c0_21] : memref<16x128xf32, #tpu.memory_space<vmem>>, vector<16x128xf32>
    tpu.vector_store %arg10[%c0_20, %c0_21], %19 {strides = array<i32>} : memref<16x128xf32, #tpu.memory_space<vmem>>, vector<16x128xf32>,
    return
  }
  func.func @transform_0(%arg0: i32) -> (i32, i32) {
    %c0_i32 = arith.constant 0 : i32
    %c0_i32_0 = arith.constant 0 : i32
    return %arg0, %c0_i32 : i32, i32
  }
  func.func @transform_1(%arg0: i32) -> (i32, i32) {
    %c0_i32 = arith.constant 0 : i32
    %c0_i32_0 = arith.constant 0 : i32
    return %arg0, %c0_i32 : i32, i32
  }
  func.func @transform_2(%arg0: i32) -> (i32, i32) {
    %c0_i32 = arith.constant 0 : i32
    %c0_i32_0 = arith.constant 0 : i32
    %c0_i32_1 = arith.constant 0 : i32
    return %c0_i32, %c0_i32_0 : i32, i32
  }
  func.func @transform_3(%arg0: i32) -> (i32, i32) {
    %c0_i32 = arith.constant 0 : i32
    %c0_i32_0 = arith.constant 0 : i32
    %c0_i32_1 = arith.constant 0 : i32
    return %c0_i32, %c0_i32_0 : i32, i32
  }
  func.func @transform_4(%arg0: i32) -> (i32, i32) {
    %c0_i32 = arith.constant 0 : i32
    %c0_i32_0 = arith.constant 0 : i32
    %c0_i32_1 = arith.constant 0 : i32
    return %c0_i32, %c0_i32_0 : i32, i32
  }
  func.func @transform_5(%arg0: i32) -> (i32, i32) {
    %c0_i32 = arith.constant 0 : i32
    %c0_i32_0 = arith.constant 0 : i32
    %c0_i32_1 = arith.constant 0 : i32
    return %c0_i32, %c0_i32_0 : i32, i32
  }
  func.func @transform_6(%arg0: i32) -> (i32, i32) {
    %c0_i32 = arith.constant 0 : i32
    %c0_i32_0 = arith.constant 0 : i32
    %c0_i32_1 = arith.constant 0 : i32
    return %c0_i32, %c0_i32_0 : i32, i32
  }
  func.func @transform_7(%arg0: i32) -> (i32, i32) {
    %c0_i32 = arith.constant 0 : i32
    %c0_i32_0 = arith.constant 0 : i32
    %c0_i32_1 = arith.constant 0 : i32
    return %c0_i32, %c0_i32_0 : i32, i32
  }
  func.func @transform_8(%arg0: i32) -> (i32, i32) {
    %c0_i32 = arith.constant 0 : i32
    %c0_i32_0 = arith.constant 0 : i32
    return %arg0, %c0_i32 : i32, i32
  }
  func.func @transform_9(%arg0: i32) -> (i32, i32) {
    %c0_i32 = arith.constant 0 : i32
    %c0_i32_0 = arith.constant 0 : i32
    return %arg0, %c0_i32 : i32, i32
  }
}

</mosaic_0001>

<bundles_post_ra>
// kernel: tpu_custom_call.1
= control target key start
LH: loop header
LB: loop body
LE: loop exit
PB: predicated region body
PF: predicated region fallthrough
CT: control target
= control target key end

     0   :  { %s2177_s0 = inlined_call_operand.hbm [shape: f32[32,128], index: 0, kind: input, shape index: {}]   ;;  %s2178_s1 = inlined_call_operand.hbm [shape: f32[32,128], index: 1, kind: input, shape index: {}]   ;;  %s2179_s2 = inlined_call_operand.hbm [shape: f32[128,128], index: 2, kind: input, shape index: {}]   ;;  %s2180_s3 = inlined_call_operand.vmem [shape: f32[1,128], index: 3, kind: input, shape index: {}]   ;;  %s2181_s4 = inlined_call_operand.hbm [shape: f32[128,128], index: 4, kind: input, shape index: {}]   ;;  %s2182_s5 = inlined_call_operand.vmem [shape: f32[1,128], index: 5, kind: input, shape index: {}]   ;;  %s2183_s6 = inlined_call_operand.hbm [shape: f32[128,128], index: 6, kind: input, shape index: {}]   ;;  %s2184_s7 = inlined_call_operand.vmem [shape: f32[1,128], index: 7, kind: input, shape index: {}]   ;;  %s2185_s8 = inlined_call_operand.hbm [shape: f32[32,128], index: 8, kind: output, shape index: {0}]   ;;  %s2186_s9 = inlined_call_operand.hbm [shape: f32[32,128], index: 9, kind: output, shape index: {1}]  }
   0x1   :  { %2197 = sst [smem:[#allocation23_spill]] %s2177_s0 }
   0x2   :  { %2198 = sst [smem:[#allocation24_spill]] %s2179_s2 }
   0x3   :  { %2199 = sst [smem:[#allocation25_spill]] %s2181_s4 }
   0x4   :  { %2200 = sst [smem:[#allocation26_spill]] %s2183_s6 }
   0x5   :  { %2201 = sst [smem:[#allocation27_spill]] %s2186_s9 }
   0x6   :  { %15 = vsyncpa [#allocation3], 0 }
   0x7   :  { %17 = vsyncpa [#allocation3 + $0x1], 0 }
   0x8   :  { %18 = vsyncpa [#allocation6], 0 }
   0x9   :  { %20 = vsyncpa [#allocation6 + $0x1], 0 }
   0xa   :  { %21 = vsyncpa [#allocation9], 0 }
   0xb   :  { %22 = vsyncpa [#allocation4], 0 }
   0xc   :  { %24 = vsyncpa [#allocation4 + $0x1], 0 }
   0xd   :  { %25 = vsyncpa [#allocation13], 0 }
   0xe   :  { %27 = vsyncpa [#allocation13 + $0x1], 0  ;;  %s1800_s30 = smov 0   ;;  %s1802_s10 = smov 0  }
   0xf   :  { %s1804_s11 = smov 0   ;;  %s1806_s12 = smov 0  }
  0x10 LB: > { %2202 = sst [smem:[#allocation20_spill]] %s1725_s30  ;;  %s1821_s13 = sadd.s32 4294967295, %s1737_s12   ;;  %s1737_s12 = sphi %s1806_s12, %s2234_s12   ;;  %s1733_s11 = sphi %s1804_s11, %s2233_s11   ;;  %s1729_s10 = sphi %s1802_s10, %s2232_s10   ;;  %s1725_s30 = sphi %s1800_s30, %s2231_s30  }
  0x11   : > { %s1017_s14 = sadd.s32 4294967294, %s1737_s12   ;;  %p53_p0 = scmp.ne.s32.totalorder %s1729_s10, %s1725_s30 }
  0x12   : > { %p2187_p1 = scmp.eq.s32.totalorder %s1821_s13, 0  ;;  %p235_p3 = scmp.eq.s32.totalorder %s1017_s14, 1 }
  0x13   : > { %p1018_p5 = scmp.ge.s32.totalorder %s1737_s12, 1  ;;  %p268_p7 = scmp.lt.s32.totalorder %s1737_s12, 3 }
  0x14   : > { %p1830_p4 = por %p2187_p1, %p53_p0  ;;  %p1835_p6 = por %p235_p3, %p53_p0 }
  0x15   : > { %p1840_p8 = pnand %p1018_p5, %p268_p7  ;;  %s1739_s18 = smov [#allocation7]  }
  0x16   : > { %s2203_s15 = scalar_select %p1830_p4, 1, 0 }
  0x17   : > { %s2204_s16 = scalar_select %p1835_p6, 1, 0 }
  0x18   : > { %s2206_s17 = scalar_select %p1840_p8, 1, 0 }
  0x19   : > { %2205 = sst [smem:[#allocation21_spill]] %s2204_s16  ;;  %s280_s19 = sshll.u32 %s1739_s18, 4  ;;  %s1844_s19 = int_to_ptr.vmem [resolvable:$true] %s280_s19 }
  0x1a   : > { %p1412_p9 = pneg %p1840_p8  ;;  %s1740_s21 = smov [#allocation8]  }
  0x1b   : > { %s296_s22 = sshll.u32 %s1740_s21, 4  ;;  %s1741_s23 = smov [#allocation10]   ;;  %s1855_s22 = int_to_ptr.vmem [resolvable:$true] %s296_s22 }
  0x1c   : > { %p1851_p11 = pnand %p1412_p9, %p2187_p1  ;;  %s1857_s24 = sshll.u32 %s1741_s23, 4  ;;  %s313_s24 = int_to_ptr.vmem [resolvable:$true] %s1857_s24 }
  0x1d   : > { %s2208_s2 = sld [smem:[#allocation24_spill]] }
  0x1e   : > { %p1867_p13 = pneg %p1851_p11 }
  0x23   : > { %s1483_s27 = scalar_lea.hbm %s2208_s2, 2048 }
  0x24   : > { %p1484_p12 = scmp.ne.s32.totalorder %s2208_s2, %s1483_s27  ;;  %p1490_p5 = scmp.lt.u32.totalorder %s1483_s27, %s2208_s2 }
  0x26   : > { %p1486_p0 = pnand %p1867_p13, %p1484_p12 }
  0x28   : > { %p1487_p3 = pneg %p1486_p0 }
  0x2a   : > { %p1492_p7 = pnand %p1490_p5, %p1487_p3 }
  0x2c   : > { %1495 = shalt.err (!%p1492_p7)
}
  0x2d   : > { %s1496_s23 = scalar_lea.vmem %s1844_s19, 2048  ;;  %p1504_p2 = scmp.lt.s32.totalorder %s1844_s19, %s1844_s19 }
  0x2e   : > { %p1497_p9 = scmp.ne.s32.totalorder %s1844_s19, %s1496_s23  ;;  %p1505_p6 = scmp.lt.s32.totalorder %s1496_s23, %s1496_s23 }
  0x30   : > { %p1499_p10 = pnand %p1497_p9, %p1867_p13  ;;  %p1506_p12 = por %p1505_p6, %p1504_p2 }
  0x32   : > { %p1500_p1 = pneg %p1499_p10 }
  0x34   : > { %p1507_p0 = pnand %p1506_p12, %p1500_p1 }
  0x36   : > { %1510 = shalt.err (!%p1507_p0)
}
  0x37   : > { %s2193_s25 = smov 128   ;;  %s2195_s26 = smov 8  }
  0x38   : > { %1415 = dma.hbm_to_vmem [thread:$0]  (!%p1851_p11), %s2208_s2, 2048, %s1844_s19, [#allocation6], %s2193_s25, %s2193_s25, %s2195_s26  }
  0x39   : > { %s2210_s4 = sld [smem:[#allocation25_spill]] }
  0x3f   : > { %s1511_s21 = scalar_lea.hbm %s2210_s4, 2048 }
  0x40   : > { %p1512_p1 = scmp.ne.s32.totalorder %s2210_s4, %s1511_s21  ;;  %p1518_p10 = scmp.lt.u32.totalorder %s1511_s21, %s2210_s4 }
  0x42   : > { %p1514_p2 = pnand %p1512_p1, %p1867_p13 }
  0x44   : > { %p1515_p6 = pneg %p1514_p2 }
  0x46   : > { %p1520_p3 = pnand %p1518_p10, %p1515_p6 }
  0x48   : > { %1523 = shalt.err (!%p1520_p3)
}
  0x49   : > { %s1524_s19 = scalar_lea.vmem %s1855_s22, 2048  ;;  %p1532_p12 = scmp.lt.s32.totalorder %s1855_s22, %s1855_s22 }
  0x4a   : > { %p1525_p5 = scmp.ne.s32.totalorder %s1855_s22, %s1524_s19  ;;  %p1533_p0 = scmp.lt.s32.totalorder %s1524_s19, %s1524_s19 }
  0x4c   : > { %p1527_p7 = pnand %p1525_p5, %p1867_p13  ;;  %p1534_p1 = por %p1533_p0, %p1532_p12 }
  0x4e   : > { %p1528_p9 = pneg %p1527_p7 }
  0x50   : > { %p1535_p2 = pnand %p1534_p1, %p1528_p9 }
  0x52   : > { %1538 = shalt.err (!%p1535_p2)
}
  0x53   : > { %1418 = dma.hbm_to_vmem [thread:$0]  (!%p1851_p11), %s2210_s4, 2048, %s1855_s22, [#allocation9], %s2193_s25, %s2193_s25, %s2195_s26  }
  0x54   : > { %s2211_s6 = sld [smem:[#allocation26_spill]] }
  0x5a   : > { %s1539_s28 = scalar_lea.hbm %s2211_s6, 2048 }
  0x5b   : > { %p1540_p6 = scmp.ne.s32.totalorder %s2211_s6, %s1539_s28  ;;  %p1546_p5 = scmp.lt.u32.totalorder %s1539_s28, %s2211_s6 }
  0x5d   : > { %p1542_p10 = pnand %p1540_p6, %p1867_p13 }
  0x5f   : > { %p1543_p3 = pneg %p1542_p10 }
  0x61   : > { %p1548_p7 = pnand %p1546_p5, %p1543_p3 }
  0x63   : > { %1551 = shalt.err (!%p1548_p7)
}
  0x64   : > { %s1552_s19 = scalar_lea.vmem %s313_s24, 2048  ;;  %p1560_p1 = scmp.lt.s32.totalorder %s313_s24, %s313_s24 }
  0x65   : > { %p1553_p9 = scmp.ne.s32.totalorder %s313_s24, %s1552_s19  ;;  %p1561_p2 = scmp.lt.s32.totalorder %s1552_s19, %s1552_s19 }
  0x67   : > { %p1555_p12 = pnand %p1553_p9, %p1867_p13  ;;  %p1562_p4 = por %p1561_p2, %p1560_p1 }
  0x69   : > { %p1556_p0 = pneg %p1555_p12 }
  0x6b   : > { %p1563_p8 = pnand %p1562_p4, %p1556_p0 }
  0x6d   : > { %1566 = shalt.err (!%p1563_p8)
}
  0x6e   : > { %1421 = dma.hbm_to_vmem [thread:$0]  (!%p1851_p11), %s2211_s6, 2048, %s313_s24, [#allocation9], %s2193_s25, %s2193_s25, %s2195_s26  }
  0x6f   : > { %s1940_s14 = sadd.s32 1, %s1737_s12   ;;  %s40_s30 = sadd.s32 1, %s1733_s11 }
  0x70   : > { %s37_s20 = ssub.s32 %s1737_s12, %s1940_s14  ;;  %p47_p8 = scmp.ne.s32.totalorder %s1733_s11, %s1729_s10 }
  0x71   : > { %p38_p4 = scmp.eq.s32.totalorder %s37_s20, 0  ;;  %p48_p13 = scmp.eq.s32.totalorder %s1737_s12, 0 }
  0x72   : > { %p1439_p6 = scmp.lt.s32.totalorder %s1737_s12, 2  ;;  %p2213_p3 = scmp.eq.s32.totalorder %s1821_s13, 1 }
  0x73   : > { %s1950_s16 = scalar_select %p38_p4, %s1733_s11, %s40_s30  }
  0x74   : > { %p49_p10 = por %p48_p13, %p47_p8  ;;  %p1954_p5 = por %p2213_p3, %p47_p8 }
  0x75   : > { %2212 = sst [smem:[#allocation22_spill]] %s1950_s16  ;;  %s329_s28 = sand.u32 1, %s1733_s11  }
  0x76   : > { %s1048_s29 = sshll.u32 %s1737_s12, 8  ;;  %s1960_s24 = sshll.u32 %s329_s28, 4 }
  0x77   : > { %s2215_s0 = sld [smem:[#allocation23_spill]]  ;;  %s333_s19 = scalar_lea.vmem [#allocation2], %s1960_s24 }
  0x78   : > { %s340_s22 = sshll.u32 %s333_s19, 4  ;;  %p1968_p11 = pnand %p1439_p6, %p49_p10  ;;  %s1972_s22 = int_to_ptr.vmem [resolvable:$true] %s340_s22 }
  0x79   : > { %s1977_s18 = scalar_lea.hbm %s2178_s1, %s1048_s29  ;;  %s1979_s21 = scalar_lea.sflag [#allocation3], %s329_s28 }
  0x7a   : > { %p1569_p9 = pneg %p1968_p11 }
  0x7d   : > { %s1965_s23 = scalar_lea.hbm %s2215_s0, %s1048_s29  ;;  %s1572_s2 = scalar_lea.hbm %s2215_s0, 512 }
  0x7e   : > { %s1567_s25 = scalar_lea.hbm %s1965_s23, 256  ;;  %p1573_p1 = scmp.lt.u32.totalorder %s1965_s23, %s2215_s0 }
  0x7f   : > { %p1568_p7 = scmp.ne.s32.totalorder %s1965_s23, %s1567_s25  ;;  %p1574_p2 = scmp.lt.u32.totalorder %s1572_s2, %s1567_s25 }
  0x80   : > { %p1576_p8 = scmp.lt.u32.totalorder %s1567_s25, %s1965_s23 }
  0x81   : > { %p1570_p12 = pnand %p1569_p9, %p1568_p7  ;;  %p1575_p4 = por %p1574_p2, %p1573_p1 }
  0x83   : > { %p1571_p0 = pneg %p1570_p12  ;;  %p1577_p13 = por %p1576_p8, %p1575_p4 }
  0x85   : > { %p1578_p6 = pnand %p1577_p13, %p1571_p0 }
  0x87   : > { %1581 = shalt.err (!%p1578_p6)
}
  0x88   : > { %s1582_s28 = scalar_lea.vmem %s1972_s22, 256  ;;  %s1744_s26 = smov [#allocation2]  }
  0x89   : > { %p1583_p10 = scmp.ne.s32.totalorder %s1972_s22, %s1582_s28  ;;  %s1587_s29 = sshll.u32 %s1744_s26, 4  ;;  %s1588_s29 = int_to_ptr.vmem [resolvable:$false] %s1587_s29 }
  0x8a   : > { %s1589_s4 = scalar_lea.vmem %s1588_s29, 512  ;;  %p1590_p12 = scmp.lt.s32.totalorder %s1972_s22, %s1588_s29 }
  0x8b   : > { %p1585_p3 = pnand %p1583_p10, %p1569_p9  ;;  %p1591_p1 = scmp.lt.s32.totalorder %s1589_s4, %s1582_s28 }
  0x8d   : > { %p1586_p7 = pneg %p1585_p3  ;;  %p1592_p2 = por %p1591_p1, %p1590_p12 }
  0x8f   : > { %p1593_p4 = pnand %p1592_p2, %p1586_p7 }
  0x91   : > { %1596 = shalt.err (!%p1593_p4)
}
  0x92   : > { %s2217_s2 = smov 8   ;;  %s2218_s6 = smov 128  }
  0x93   : > { %1425 = dma.hbm_to_vmem [thread:$0]  (!%p1968_p11), %s1965_s23, 256, %s1972_s22, %s1979_s21, %s2218_s6, %s2218_s6, %s2217_s2  }
  0x94   : > { %s354_s25 = scalar_lea.vmem [#allocation5], %s1960_s24  ;;  %s350_s30 = sand.u32 1, %s1737_s12  }
  0x95   : > { %s361_s20 = sshll.u32 %s354_s25, 4  ;;  %s2014_s19 = scalar_lea.sflag [#allocation6], %s350_s30  ;;  %s2012_s20 = int_to_ptr.vmem [resolvable:$true] %s361_s20 }
  0x96   : > { %s1597_s28 = scalar_lea.hbm %s1977_s18, 256  ;;  %s1602_s4 = scalar_lea.hbm %s2178_s1, 512 }
  0x97   : > { %p1598_p0 = scmp.ne.s32.totalorder %s1977_s18, %s1597_s28  ;;  %p1603_p6 = scmp.lt.u32.totalorder %s1977_s18, %s2178_s1 }
  0x98   : > { %p1604_p10 = scmp.lt.u32.totalorder %s1602_s4, %s1597_s28  ;;  %p1606_p7 = scmp.lt.u32.totalorder %s1597_s28, %s1977_s18 }
  0x99   : > { %p1600_p8 = pnand %p1598_p0, %p1569_p9 }
  0x9a   : > { %p1605_p3 = por %p1604_p10, %p1603_p6 }
  0x9b   : > { %p1601_p13 = pneg %p1600_p8 }
  0x9c   : > { %p1607_p12 = por %p1606_p7, %p1605_p3 }
  0x9e   : > { %p1608_p1 = pnand %p1607_p12, %p1601_p13 }
  0xa0   : > { %1611 = shalt.err (!%p1608_p1)
}
  0xa1   : > { %s1612_s24 = scalar_lea.vmem %s2012_s20, 256  ;;  %s1745_s23 = smov [#allocation5]  }
  0xa2   : > { %p1613_p2 = scmp.ne.s32.totalorder %s2012_s20, %s1612_s24  ;;  %s1617_s22 = sshll.u32 %s1745_s23, 4  ;;  %s1618_s22 = int_to_ptr.vmem [resolvable:$false] %s1617_s22 }
  0xa3   : > { %s1619_s0 = scalar_lea.vmem %s1618_s22, 512  ;;  %p1620_p8 = scmp.lt.s32.totalorder %s2012_s20, %s1618_s22 }
  0xa4   : > { %p1615_p4 = pnand %p1613_p2, %p1569_p9  ;;  %p1621_p6 = scmp.lt.s32.totalorder %s1619_s0, %s1612_s24 }
  0xa6   : > { %p1616_p0 = pneg %p1615_p4  ;;  %p1622_p10 = por %p1621_p6, %p1620_p8 }
  0xa8   : > { %p1623_p3 = pnand %p1622_p10, %p1616_p0 }
  0xaa   : > { %1626 = shalt.err (!%p1623_p3)
}
  0xab   : > { %1428 = dma.hbm_to_vmem [thread:$0]  (!%p1968_p11), %s1977_s18, 256, %s2012_s20, %s2014_s19, %s2218_s6, %s2218_s6, %s2217_s2  }
  0xac   : > { %p2219_p9 = scmp.ne.s32.totalorder %s2206_s17, 0 }
  0xad   : > { %s2046_s16 = sand.u32 (!%p2219_p9), 1, %s1729_s10   ;;  %p2220_p13 = scmp.ne.s32.totalorder (!%p2219_p9), %s2203_s15, 0 }
  0xae   : > { %373 = sbr.rel (%p2219_p9) target bundleno = 696 (0x2b8), region = 52  ;;  %s2049_s21 = sshll.u32 (!%p2219_p9), %s2046_s16, 4 }
  0xaf   : > { %s376_s9 = scalar_lea.sflag (!%p2219_p9), [#allocation3], %s2046_s16  ;;  %s379_s25 = scalar_lea.vmem (!%p2219_p9), [#allocation2], %s2049_s21 }
  0xb5   : > { %1700 = dma.done.wait (%p2220_p13), %s376_s9, 256  }
  0xb6   : > { %1702 = vsyncadd (%p2220_p13), %s376_s9, 4294967040  ;;  %s384_s17 = sand.u32 1, %s1821_s13   ;;  %s388_s2 = scalar_lea.vmem [#allocation5], %s2049_s21 }
  0xb7   : > { %s385_s18 = scalar_lea.sflag [#allocation6], %s384_s17 }
  0xb8   : > { %1704 = dma.done.wait (%p2220_p13), %s385_s18, 256  }
  0xb9   : > { %1706 = vsyncadd (%p2220_p13), %s385_s18, 4294967040  ;;  %p2221_p11 = scmp.eq.s32.totalorder %s1821_s13, 0 }
  0xbb   : > { %1708 = dma.done.wait (%p2221_p11), [#allocation6], 2048   ;;  %p2222_p7 = pmov %p2221_p11 }
  0xbd   : > { %1710 = vsyncadd (%p2222_p7), [#allocation6], 4294965248  ;;  %p2223_p12 = pmov %p2222_p7 }
  0xbe   : > { %p2224_p1 = pmov %p2222_p7 }
  0xbf   : > { %1712 = dma.done.wait (%p2223_p12), [#allocation9], 4096  }
  0xc0   : > { %1714 = vsyncadd (%p2224_p1), [#allocation9], 4294963200  ;;  %v453_v0 = vld [vmem:[#allocation7] sm:$0xff]  ;;  %v454_v1 = vld [vmem:[#allocation7 + $0x8] sm:$0xff]  ;;  %s437_s20 = scalar_lea.vmem [#allocation11], %s2049_s21  ;;  %s444_s19 = scalar_lea.vmem [#allocation12], %s2049_s21 }
  0xc1   : > { %v455_v2 = vld [vmem:[#allocation7 + $0x10] sm:$0xff]  ;;  %v1264_v3 = vpack.c.bf16 %v454_v1, %v453_v0  ;;  %v456_v4 = vld [vmem:[#allocation7 + $0x18] sm:$0xff]  ;;  %v457_v6 = vld [vmem:[#allocation7 + $0x20] sm:$0xff]  ;;  %s845_s30 = sshll.u32 %s437_s20, 4  ;;  %s861_s28 = sshll.u32 %s444_s19, 4  ;;  %s2091_s30 = int_to_ptr.vmem [resolvable:$true] %s845_s30  ;;  %s2093_s28 = int_to_ptr.vmem [resolvable:$true] %s861_s28 }
  0xc2   : > { %v1268_v5 = vpack.c.bf16 %v456_v4, %v455_v2  ;;  %v458_v7 = vld [vmem:[#allocation7 + $0x28] sm:$0xff]  ;;  %v449_v9 = vld [vmem:[%s379_s25] sm:$0xff]  ;;  %v460_v12 = vld [vmem:[#allocation7 + $0x38] sm:$0xff]  ;;  %s1050_s23 = sshll.u32 %s1821_s13, 8  ;;  %s827_s18 = scalar_lea.sflag [#allocation4], %s2046_s16 }
  0xc3   : > { %1265 = vmatprep.subr.bf16.mxu0 %v1264_v3  ;;  %1297 = vmatprep.subr.bf16.mxu1 %v1264_v3  ;;  %v1272_v8 = vpack.c.bf16 %v458_v7, %v457_v6  ;;  %v451_v10 = vld [vmem:[%s388_s2] sm:$0xff]  ;;  %v462_v15 = vld [vmem:[#allocation7 + $0x48] sm:$0xff]  ;;  %v464_v18 = vld [vmem:[#allocation7 + $0x58] sm:$0xff]  ;;  %s2098_s21 = scalar_lea.hbm %s2185_s8, %s1050_s23  ;;  %s1746_s15 = smov [#allocation11]  }
  0xc4   : > { %1267 = vmatpush3.bf16.msra.mxu0 %v1264_v3  ;;  %1299 = vmatpush3.bf16.msra.mxu1 %v1264_v3  ;;  %v459_v11 = vld [vmem:[#allocation7 + $0x30] sm:$0xff]  ;;  %v461_v14 = vld [vmem:[#allocation7 + $0x40] sm:$0xff]  ;;  %v466_v21 = vld [vmem:[#allocation7 + $0x68] sm:$0xff]  ;;  %s1631_s6 = sshll.u32 %s1746_s15, 4  ;;  %s1632_s6 = int_to_ptr.vmem [resolvable:$false] %s1631_s6 }
  0xc5   : > { %1269 = vmatprep.subr.bf16.mxu0 %v1268_v5  ;;  %1301 = vmatprep.subr.bf16.mxu1 %v1268_v5  ;;  %v1276_v13 = vpack.c.bf16 %v460_v12, %v459_v11  ;;  %v1280_v16 = vpack.c.bf16 %v462_v15, %v461_v14  ;;  %v463_v17 = vld [vmem:[#allocation7 + $0x50] sm:$0xff]  ;;  %v465_v20 = vld [vmem:[#allocation7 + $0x60] sm:$0xff]  ;;  %v468_v24 = vld [vmem:[#allocation7 + $0x78] sm:$0xff]  ;;  %s1633_s26 = scalar_lea.vmem %s1632_s6, 512  ;;  %p1634_p8 = scmp.lt.s32.totalorder %s2091_s30, %s1632_s6 }
  0xc6   : > { %1156 = vmatprep.mubr.f32.mxu0 %v449_v9  ;;  %1191 = vmatprep.mubr.f32.mxu1 %v451_v10  ;;  %v1284_v19 = vpack.c.bf16 %v464_v18, %v463_v17  ;;  %v1288_v22 = vpack.c.bf16 %v466_v21, %v465_v20  ;;  %v467_v23 = vld [vmem:[#allocation7 + $0x70] sm:$0xff]  ;;  %v626_v26 = vld [vmem:[#allocation8] sm:$0xff]  ;;  %v627_v27 = vld [vmem:[#allocation8 + $0x8] sm:$0xff] }
  0xc7   : > { %v1292_v25 = vpack.c.bf16 %v468_v24, %v467_v23  ;;  %v724_v28 = vld [vmem:[#allocation10] sm:$0xff]  ;;  %v725_v29 = vld [vmem:[#allocation10 + $0x8] sm:$0xff]  ;;  %v1328_v30 = vpack.c.bf16 %v627_v27, %v626_v26  ;;  %v628_v32 = vld [vmem:[#allocation8 + $0x10] sm:$0xff] }
  0xc8   : > { %1271 = vmatpush3.bf16.msra.mxu0 %v1268_v5  ;;  %1303 = vmatpush3.bf16.msra.mxu1 %v1268_v5  ;;  %v1360_v31 = vpack.c.bf16 %v725_v29, %v724_v28  ;;  %v629_v33 = vld [vmem:[#allocation8 + $0x18] sm:$0xff]  ;;  %v726_v34 = vld [vmem:[#allocation10 + $0x10] sm:$0xff]  ;;  %v630_v40 = vld [vmem:[#allocation8 + $0x20] sm:$0xff] }
  0xc9   : > { %1273 = vmatprep.subr.bf16.mxu0 %v1272_v8  ;;  %1305 = vmatprep.subr.bf16.mxu1 %v1272_v8  ;;  %v727_v35 = vld [vmem:[#allocation10 + $0x18] sm:$0xff]  ;;  %v1332_v38 = vpack.c.bf16 %v629_v33, %v628_v32  ;;  %v631_v41 = vld [vmem:[#allocation8 + $0x28] sm:$0xff]  ;;  %v728_v42 = vld [vmem:[#allocation10 + $0x20] sm:$0xff] }
  0xca   : > { %v450_v36 = vld [vmem:[%s379_s25 + $0x8] sm:$0xff]  ;;  %v1364_v39 = vpack.c.bf16 %v727_v35, %v726_v34  ;;  %v1336_v44 = vpack.c.bf16 %v631_v41, %v630_v40  ;;  %v632_v46 = vld [vmem:[#allocation8 + $0x30] sm:$0xff]  ;;  %v634_v52 = vld [vmem:[#allocation8 + $0x40] sm:$0xff]  ;;  %s2225_s25 = sld [smem:[#allocation27_spill]] }
  0xcb   : > { %v452_v37 = vld [vmem:[%s388_s2 + $0x8] sm:$0xff]  ;;  %v730_v48 = vld [vmem:[#allocation10 + $0x30] sm:$0xff]  ;;  %v732_v54 = vld [vmem:[#allocation10 + $0x40] sm:$0xff]  ;;  %s1627_s2 = scalar_lea.vmem %s2091_s30, 256 }
  0xcc   : > { %1275 = vmatpush3.bf16.msra.mxu0 %v1272_v8  ;;  %1307 = vmatpush3.bf16.msra.mxu1 %v1272_v8  ;;  %v729_v43 = vld [vmem:[#allocation10 + $0x28] sm:$0xff]  ;;  %v633_v47 = vld [vmem:[#allocation8 + $0x38] sm:$0xff]  ;;  %v636_v58 = vld [vmem:[#allocation8 + $0x50] sm:$0xff]  ;;  %p1628_p2 = scmp.ne.s32.totalorder %s2091_s30, %s1627_s2  ;;  %p1635_p6 = scmp.lt.s32.totalorder %s1633_s26, %s1627_s2 }
  0xcd   : > { %1277 = vmatprep.subr.bf16.mxu0 %v1276_v13  ;;  %1309 = vmatprep.subr.bf16.mxu1 %v1276_v13  ;;  %v1368_v45 = vpack.c.bf16 %v729_v43, %v728_v42  ;;  %v731_v49 = vld [vmem:[#allocation10 + $0x38] sm:$0xff]  ;;  %v1340_v50 = vpack.c.bf16 %v633_v47, %v632_v46  ;;  %v635_v53 = vld [vmem:[#allocation8 + $0x48] sm:$0xff]  ;;  %v734_v60 = vld [vmem:[#allocation10 + $0x50] sm:$0xff] }
  0xce   : > { %v1372_v51 = vpack.c.bf16 %v731_v49, %v730_v48  ;;  %v733_v55 = vld [vmem:[#allocation10 + $0x48] sm:$0xff]  ;;  %v1344_v56 = vpack.c.bf16 %v635_v53, %v634_v52  ;;  %v637_v59 = vld [vmem:[#allocation8 + $0x58] sm:$0xff]  ;;  %v638_v0 = vld [vmem:[#allocation8 + $0x60] sm:$0xff]  ;;  %p1629_p4 = pnand %p1628_p2, %p1954_p5  ;;  %p1636_p10 = por %p1635_p6, %p1634_p8 }
  0xcf   : > { %v1376_v57 = vpack.c.bf16 %v733_v55, %v732_v54  ;;  %v735_v61 = vld [vmem:[#allocation10 + $0x58] sm:$0xff]  ;;  %v1348_v62 = vpack.c.bf16 %v637_v59, %v636_v58  ;;  %v639_v1 = vld [vmem:[#allocation8 + $0x68] sm:$0xff]  ;;  %v736_v2 = vld [vmem:[#allocation10 + $0x60] sm:$0xff] }
  0xd0   : > { %1279 = vmatpush3.bf16.msra.mxu0 %v1276_v13  ;;  %1311 = vmatpush3.bf16.msra.mxu1 %v1276_v13  ;;  %v1380_v63 = vpack.c.bf16 %v735_v61, %v734_v60  ;;  %v737_v3 = vld [vmem:[#allocation10 + $0x68] sm:$0xff]  ;;  %v1352_v4 = vpack.c.bf16 %v639_v1, %v638_v0  ;;  %v640_v6 = vld [vmem:[#allocation8 + $0x70] sm:$0xff]  ;;  %v641_v7 = vld [vmem:[#allocation8 + $0x78] sm:$0xff]  ;;  %s2103_s17 = scalar_lea.hbm %s2225_s25, %s1050_s23  ;;  %p1630_p0 = pneg %p1629_p4 }
  0xd1   : > { %1281 = vmatprep.subr.bf16.mxu0 %v1280_v16  ;;  %1313 = vmatprep.subr.bf16.mxu1 %v1280_v16  ;;  %v1384_v5 = vpack.c.bf16 %v737_v3, %v736_v2  ;;  %v738_v8 = vld [vmem:[#allocation10 + $0x70] sm:$0xff]  ;;  %v1356_v9 = vpack.c.bf16 %v641_v7, %v640_v6  ;;  %v739_v10 = vld [vmem:[#allocation10 + $0x78] sm:$0xff]  ;;  %v1037_v12 = vld [vmem:[%s2180_s3] ss:$0 sm:$0xff] }
  0xd2   : > { %v1388_v11 = vpack.c.bf16 %v739_v10, %v738_v8  ;;  %v1038_v21 = vld [vmem:[%s2182_s5] ss:$0 sm:$0xff]  ;;  %p1637_p3 = pnand %p1636_p10, %p1630_p0 }
  0xd4   : > { %1283 = vmatpush3.bf16.msra.mxu0 %v1280_v16  ;;  %1315 = vmatpush3.bf16.msra.mxu1 %v1280_v16 }
  0xd5   : > { %1285 = vmatprep.subr.bf16.mxu0 %v1284_v19  ;;  %1317 = vmatprep.subr.bf16.mxu1 %v1284_v19 }
  0xd8   : > { %1287 = vmatpush3.bf16.msra.mxu0 %v1284_v19  ;;  %1319 = vmatpush3.bf16.msra.mxu1 %v1284_v19 }
  0xd9   : > { %1289 = vmatprep.subr.bf16.mxu0 %v1288_v22  ;;  %1321 = vmatprep.subr.bf16.mxu1 %v1288_v22 }
  0xdc   : > { %1291 = vmatpush3.bf16.msra.mxu0 %v1288_v22  ;;  %1323 = vmatpush3.bf16.msra.mxu1 %v1288_v22  ;;  %v1039_v22 = vld [vmem:[%s2184_s7] ss:$0 sm:$0xff] }
  0xdd   : > { %1293 = vmatprep.subr.bf16.mxu0 %v1292_v25  ;;  %1325 = vmatprep.subr.bf16.mxu1 %v1292_v25 }
  0xe0   : > { %1295 = vmatpush3.bf16.msra.mxu0 %v1292_v25  ;;  %1327 = vmatpush3.bf16.msra.mxu1 %v1292_v25 }
  0xe1   : > { %1329 = vmatprep.subr.bf16.mxu0 %v1328_v30  ;;  %1361 = vmatprep.subr.bf16.mxu1 %v1360_v31 }
  0xe3   : > { %1157 = vmatmul.mubr.f32.vlgmr.msra.gmra.mrb[0].mxu0 %v450_v36  ;;  %1192 = vmatmul.mubr.f32.vlgmr.msra.gmra.mrb[0].mxu1 %v452_v37 }
  0xe4   : > { %1331 = vmatpush3.bf16.msra.mxu0 %v1328_v30  ;;  %1363 = vmatpush3.bf16.msra.mxu1 %v1360_v31 }
  0xe5   : > { %1333 = vmatprep.subr.bf16.mxu0 %v1332_v38  ;;  %1365 = vmatprep.subr.bf16.mxu1 %v1364_v39 }
  0xe8   : > { %1335 = vmatpush3.bf16.msra.mxu0 %v1332_v38  ;;  %1367 = vmatpush3.bf16.msra.mxu1 %v1364_v39 }
  0xe9   : > { %1337 = vmatprep.subr.bf16.mxu0 %v1336_v44  ;;  %1369 = vmatprep.subr.bf16.mxu1 %v1368_v45 }
  0xec   : > { %1339 = vmatpush3.bf16.msra.mxu0 %v1336_v44  ;;  %1371 = vmatpush3.bf16.msra.mxu1 %v1368_v45 }
  0xed   : > { %1341 = vmatprep.subr.bf16.mxu0 %v1340_v50  ;;  %1373 = vmatprep.subr.bf16.mxu1 %v1372_v51 }
  0xf0   : > { %1343 = vmatpush3.bf16.msra.mxu0 %v1340_v50  ;;  %1375 = vmatpush3.bf16.msra.mxu1 %v1372_v51 }
  0xf1   : > { %1345 = vmatprep.subr.bf16.mxu0 %v1344_v56  ;;  %1377 = vmatprep.subr.bf16.mxu1 %v1376_v57 }
  0xf4   : > { %1347 = vmatpush3.bf16.msra.mxu0 %v1344_v56  ;;  %1379 = vmatpush3.bf16.msra.mxu1 %v1376_v57 }
  0xf5   : > { %1349 = vmatprep.subr.bf16.mxu0 %v1348_v62  ;;  %1381 = vmatprep.subr.bf16.mxu1 %v1380_v63 }
  0xf8   : > { %1351 = vmatpush3.bf16.msra.mxu0 %v1348_v62  ;;  %1383 = vmatpush3.bf16.msra.mxu1 %v1380_v63 }
  0xf9   : > { %1353 = vmatprep.subr.bf16.mxu0 %v1352_v4  ;;  %1385 = vmatprep.subr.bf16.mxu1 %v1384_v5 }
  0xfc   : > { %1355 = vmatpush3.bf16.msra.mxu0 %v1352_v4  ;;  %1387 = vmatpush3.bf16.msra.mxu1 %v1384_v5 }
  0xfd   : > { %1357 = vmatprep.subr.bf16.mxu0 %v1356_v9  ;;  %1389 = vmatprep.subr.bf16.mxu1 %v1388_v11 }
 0x100   : > { %1359 = vmatpush3.bf16.msra.mxu0 %v1356_v9  ;;  %1391 = vmatpush3.bf16.msra.mxu1 %v1388_v11 }
 0x1b6   : > { %v1158_v13 = vpop.f32.mrb[0].mxu0  ;;  %v1193_v14 = vpop.f32.mrb[0].mxu1 }
 0x1b7   : > { %v542_v15 = vpop.f32.mrb[1].mxu0  ;;  %v617_v16 = vpop.f32.mrb[1].mxu1  ;;  %v548_v19 = vadd.f32 %v1158_v13, %v1037_v12  ;;  %v623_v20 = vadd.f32 %v1193_v14, %v1037_v12 }
 0x1b8   : > { %v543_v17 = vadd.f32 %v1037_v12, %v542_v15  ;;  %v618_v18 = vadd.f32 %v1037_v12, %v617_v16 }
 0x1ba   : > { %1226 = vmatprep.mubr.f32.mxu0 %v543_v17  ;;  %1261 = vmatprep.mubr.f32.mxu1 %v618_v18 }
 0x1bb   : > { %1227 = vmatmul.mubr.f32.vlgmr.msra.gmra.mrb[2].mxu0 %v548_v19  ;;  %1262 = vmatmul.mubr.f32.vlgmr.msra.gmra.mrb[2].mxu1 %v623_v20 }
 0x28e   : > { %v1228_v23 = vpop.f32.mrb[2].mxu0  ;;  %v1263_v24 = vpop.f32.mrb[2].mxu1 }
 0x28f   : > { %v721_v25 = vadd.f32 %v1228_v23, %v1038_v21  ;;  %v819_v26 = vadd.f32 %v1263_v24, %v1039_v22  ;;  %v715_v27 = vpop.f32.mrb[3].mxu0  ;;  %v813_v28 = vpop.f32.mrb[3].mxu1 }
 0x290   : > { %v716_v29 = vadd.f32 %v1038_v21, %v715_v27  ;;  %v814_v30 = vadd.f32 %v1039_v22, %v813_v28 }
 0x291   : > { %823 = vst [vmem:[%s437_s20 + $0x8] sm:$0xff] %v721_v25  ;;  %825 = vst [vmem:[%s444_s19 + $0x8] sm:$0xff] %v819_v26 }
 0x292   : > { %822 = vst [vmem:[%s437_s20] sm:$0xff] %v716_v29  ;;  %824 = vst [vmem:[%s444_s19] sm:$0xff] %v814_v30 }
 0x293   : > { %1640 = shalt.err (!%p1637_p3)
}
 0x294   : > { %s1641_s20 = scalar_lea.hbm %s2098_s21, 256  ;;  %s1645_s4 = scalar_lea.hbm %s2185_s8, 512 }
 0x295   : > { %p1642_p9 = scmp.ne.s32.totalorder %s2098_s21, %s1641_s20  ;;  %p1646_p7 = scmp.lt.u32.totalorder %s2098_s21, %s2185_s8 }
 0x296   : > { %p1647_p12 = scmp.lt.u32.totalorder %s1645_s4, %s1641_s20  ;;  %p1649_p2 = scmp.lt.u32.totalorder %s1641_s20, %s2098_s21 }
 0x297   : > { %p1643_p13 = pnand %p1642_p9, %p1954_p5 }
 0x298   : > { %p1648_p1 = por %p1647_p12, %p1646_p7 }
 0x299   : > { %p1644_p11 = pneg %p1643_p13 }
 0x29a   : > { %p1650_p4 = por %p1649_p2, %p1648_p1 }
 0x29c   : > { %p1651_p0 = pnand %p1650_p4, %p1644_p11 }
 0x29e   : > { %1654 = shalt.err (!%p1651_p0)
}
 0x29f   : > { %s1747_s22 = smov 128   ;;  %s1748_s0 = smov 8  }
 0x2a0   : > { %1408 = dma.vmem_to_hbm [thread:$0]  (%p1954_p5), %s2091_s30, 256, %s2098_s21, %s827_s18, %s1747_s22, %s1747_s22, %s1748_s0  }
 0x2a1   : > { %s832_s13 = scalar_lea.sflag [#allocation13], %s2046_s16  ;;  %s1655_s9 = scalar_lea.vmem %s2093_s28, 256 }
 0x2a2   : > { %p1656_p8 = scmp.ne.s32.totalorder %s2093_s28, %s1655_s9  ;;  %s1749_s2 = smov [#allocation12]  }
 0x2a3   : > { %s1659_s15 = sshll.u32 %s1749_s2, 4  ;;  %s1660_s15 = int_to_ptr.vmem [resolvable:$false] %s1659_s15 }
 0x2a4   : > { %p1657_p6 = pnand %p1656_p8, %p1954_p5  ;;  %s1661_s6 = scalar_lea.vmem %s1660_s15, 512 }
 0x2a5   : > { %p1662_p3 = scmp.lt.s32.totalorder %s2093_s28, %s1660_s15  ;;  %p1663_p9 = scmp.lt.s32.totalorder %s1661_s6, %s1655_s9 }
 0x2a6   : > { %p1658_p10 = pneg %p1657_p6 }
 0x2a7   : > { %p1664_p13 = por %p1663_p9, %p1662_p3 }
 0x2a9   : > { %p1665_p11 = pnand %p1664_p13, %p1658_p10 }
 0x2ab   : > { %1668 = shalt.err (!%p1665_p11)
}
 0x2ac   : > { %s1669_s30 = scalar_lea.hbm %s2103_s17, 256  ;;  %s1673_s26 = scalar_lea.hbm %s2225_s25, 512 }
 0x2ad   : > { %p1670_p7 = scmp.ne.s32.totalorder %s2103_s17, %s1669_s30  ;;  %p1674_p2 = scmp.lt.u32.totalorder %s2103_s17, %s2225_s25 }
 0x2ae   : > { %p1675_p4 = scmp.lt.u32.totalorder %s1673_s26, %s1669_s30  ;;  %p1677_p8 = scmp.lt.u32.totalorder %s1669_s30, %s2103_s17 }
 0x2af   : > { %p1671_p12 = pnand %p1670_p7, %p1954_p5 }
 0x2b0   : > { %p1676_p0 = por %p1675_p4, %p1674_p2 }
 0x2b1   : > { %p1672_p1 = pneg %p1671_p12 }
 0x2b2   : > { %p1678_p6 = por %p1677_p8, %p1676_p0 }
 0x2b4   : > { %p1679_p10 = pnand %p1678_p6, %p1672_p1 }
 0x2b6   : > { %1682 = shalt.err (!%p1679_p10)
}
 0x2b7   : > { %1409 = dma.vmem_to_hbm [thread:$0]  (%p1954_p5), %s2093_s28, 256, %s2103_s17, %s832_s13, %s1747_s22, %s1747_s22, %s1748_s0  }
 0x2b8 PF: > { %s2226_s29 = sld [smem:[#allocation20_spill]]  ;;  %s2227_s4 = sld [smem:[#allocation21_spill]] }
 0x2b9   : > { %p2229_p9 = scmp.ge.s32.totalorder %s1737_s12, 2 }
 0x2be   : > { %s876_s24 = sand.u32 1, %s2226_s29   ;;  %p2228_p3 = scmp.ne.s32.totalorder %s2227_s4, 0 }
 0x2bf   : > { %s877_s23 = scalar_lea.sflag [#allocation4], %s876_s24 }
 0x2c0   : > { %p1430_p13 = pnand %p2229_p9, %p2228_p3 }
 0x2c2   : > { %1716 = dma.done.wait (!%p1430_p13), %s877_s23, 256  }
 0x2c3   : > { %1718 = vsyncadd (!%p1430_p13), %s877_s23, 4294967040  ;;  %s886_s27 = scalar_lea.sflag [#allocation13], %s876_s24 }
 0x2c4   : > { %1720 = dma.done.wait (!%p1430_p13), %s886_s27, 256  }
 0x2c5   : > { %1722 = vsyncadd (!%p1430_p13), %s886_s27, 4294967040  ;;  %s2230_s16 = sld [smem:[#allocation22_spill]]  ;;  %p30_p5 = scmp.ge.s32.totalorder %s1940_s14, 4  }
 0x2c6   : > { %s2231_s30 = smov %s1729_s10  ;;  %s2232_s10 = smov %s1733_s11 }
 0x2c7   : > { %s2234_s12 = smov %s1940_s14  ;;  %32 = sbr.rel (!%p30_p5) target bundleno = 16 (0x10), region = 139 }
 0x2cb   : > { %s2233_s11 = smov %s2230_s16 }
 0x2ce   :  { %891 = vsyncpa [#allocation3], 1 }
 0x2cf   :  { %893 = vsyncpa [#allocation3 + $0x1], 1 }
 0x2d0   :  { %894 = vsyncpa [#allocation6], 1 }
 0x2d1   :  { %896 = vsyncpa [#allocation6 + $0x1], 1 }
 0x2d2   :  { %897 = vsyncpa [#allocation9], 1 }
 0x2d3   :  { %898 = vsyncpa [#allocation4], 1 }
 0x2d4   :  { %900 = vsyncpa [#allocation4 + $0x1], 1 }
 0x2d5   :  { %901 = vsyncpa [#allocation13], 1 }
 0x2d6   :  { %903 = vsyncpa [#allocation13 + $0x1], 1 }

</bundles_post_ra>
